<compile_context>
chip_gen: v7x
topology: tpu7x:2x2x1
jax: 0.10.0
libtpu: 0.0.40
codegen_flags: <defaults>
</compile_context>

<pallas_src>
import numpy as np

import jax
import jax.numpy as jnp
from jax.experimental import pallas as pl
from jax.experimental.pallas import tpu as pltpu

THRESHOLD = 1.0
DECAY = 0.9
# Spike values are exactly 0.0 / 1.0, so a narrow dtype is numerically exact.
SPIKE_DTYPE = jnp.bfloat16


def spiking_neuron_kernel(x_ref, mem_ref, spike_ref, mem_out_ref):
    # Purely elementwise (VPU) work on one (tb, Fp) row tile, fully in VMEM.
    v = mem_ref[...] + x_ref[...]                    # membrane += x
    fired = v >= THRESHOLD
    spike_ref[...] = fired.astype(spike_ref.dtype)   # fire
    # Reset where fired, decay the rest: identical to v*(1-spike)*decay.
    mem_out_ref[...] = jnp.where(fired, 0.0, v * DECAY)


def _round_up(n, m):
    return (n + m - 1) // m * m


def _choose_block_rows(B, Fp):
    """Row-tile so each f32 tile is ~4 MiB (big tiles amortize per-grid-step
    pipeline overhead for this HBM-bound streaming op), while keeping at
    least 2 grid tiles so v7x's two TensorCores both get work."""
    if B <= 32:
        return B                              # tiny batch: one full-extent block
    target_tile_bytes = 4 << 20               # 4 MiB f32 tile
    tb = max(32, (target_tile_bytes // (Fp * 4)) // 32 * 32)
    tb = min(tb, max(32, (B // 2) // 32 * 32))  # keep >= 2 grid tiles
    return tb                                  # multiple of 32 (8/16/32 tiling ok)


@jax.jit
def spiking_neuron_forward(x, membrane):
    """One SpikingNeuron step.

    x, membrane: (B, F) float32.
    Returns (spike [SPIKE_DTYPE], membrane_out [float32]), both (B, F).
    """
    B, F = x.shape
    # Lane-dense features: pad F to a multiple of 128 only if needed.  Rows are
    # never padded -- partial row tiles are handled by Pallas edge-block
    # masking, which is safe for an elementwise op (garbage reads, masked
    # writes).  Zero-padded lanes never fire (0 < threshold) and decay to 0.
    Fp = _round_up(F, 128)
    padded = Fp != F
    if padded:
        # TODO(synk): for very narrow F (e.g. F=10) flatten to 1D and retile
        # lane-dense instead of paying up to 128/F of padding traffic.
        x_p = jnp.pad(x, ((0, 0), (0, Fp - F)))
        m_p = jnp.pad(membrane, ((0, 0), (0, Fp - F)))
    else:
        x_p, m_p = x, membrane

    tb = _choose_block_rows(B, Fp)
    grid = (pl.cdiv(B, tb),)
    row_tile = pl.BlockSpec((tb, Fp), lambda i: (i, 0))

    # Advisory cost hint for XLA's scheduler around the custom call.
    elems = B * Fp
    cost = pl.CostEstimate(
        flops=3 * elems,                                     # add, cmp, mul
        transcendentals=0,
        bytes_accessed=elems * (4 + 4 + 4 + np.dtype(SPIKE_DTYPE).itemsize),
    )

    spike_p, mem_out_p = pl.pallas_call(
        spiking_neuron_kernel,
        out_shape=(
            jax.ShapeDtypeStruct((B, Fp), SPIKE_DTYPE),
            jax.ShapeDtypeStruct((B, Fp), jnp.float32),
        ),
        grid=grid,
        in_specs=[row_tile, row_tile],
        out_specs=(row_tile, row_tile),
        # membrane_out reuses membrane_in's buffer; with caller-side donation
        # over a rollout this becomes a true in-place state update.
        input_output_aliases={1: 1},
        compiler_params=pltpu.CompilerParams(
            dimension_semantics=("parallel",),   # row tiles are independent
            # Raise scoped VMEM so big tiles fit on v5e/v6e; 48 MiB stays
            # safely under v7x's 64 MiB physical VMEM per TensorCore.
            vmem_limit_bytes=48 << 20,
        ),
        cost_estimate=cost,
    )(x_p, m_p)

    if padded:
        spike_p = spike_p[:, :F]
        mem_out_p = mem_out_p[:, :F]
    return spike_p, mem_out_p


def reference_step(x, mem):
    v = mem + x
    spike = (v >= THRESHOLD).astype(jnp.float32)
    mem_out = v * (1.0 - spike) * DECAY
    return spike, mem_out


if __name__ == "__main__":
    # Small but multi-tile: 128 rows -> grid of 2 row tiles of 64, 256 features.
    B, F = 128, 256
    key = jax.random.PRNGKey(0)
    k1, k2 = jax.random.split(key)
    x1 = 1.5 * jax.random.normal(k1, (B, F), jnp.float32)
    x2 = 1.5 * jax.random.normal(k2, (B, F), jnp.float32)
    mem0 = jnp.zeros((B, F), jnp.float32)

    # Pure-JAX reference of the same math (computed up-front from the same
    # immutable inputs).
    r_spike1, r_mem1 = reference_step(x1, mem0)
    r_spike2, r_mem2 = reference_step(x2, r_mem1)

    # Step 1: fresh module (membrane starts at 0) -- the single-forward case.
    spike1, mem1 = spiking_neuron_forward(x1, mem0)
    # Step 2: stateful chaining, exercising the decay/reset semantics.
    spike2, mem2 = spiking_neuron_forward(x2, mem1)
    jax.block_until_ready((spike1, mem1, spike2, mem2))

    assert spike1.shape == (B, F) and mem1.shape == (B, F)
    assert jnp.array_equal(spike1.astype(jnp.float32), r_spike1)
    assert jnp.allclose(mem1, r_mem1, atol=1e-6, rtol=1e-6)
    assert jnp.array_equal(spike2.astype(jnp.float32), r_spike2)
    assert jnp.allclose(mem2, r_mem2, atol=1e-6, rtol=1e-6)

    print("KERNEL_OK")
</pallas_src>

<mosaic_0001>
module attributes {stable_mosaic.version = 11 : i64} {
  func.func @spiking_neuron_kernel(%arg0: i32, %arg1: memref<64x256xf32, #tpu.memory_space<vmem>>, %arg2: memref<64x256xf32, #tpu.memory_space<vmem>>, %arg3: memref<64x256xbf16, #tpu.memory_space<vmem>>, %arg4: memref<64x256xf32, #tpu.memory_space<vmem>>) attributes {dimension_semantics = [#tpu.dimension_semantics<parallel>], iteration_bounds = array<i64: 2>, scalar_prefetch = 0 : i64, scratch_operands = 0 : i64, tpu.core_type = #tpu.core_type<tc>, window_params = [{transform_indices = @transform_0, window_bounds = array<i64: 64, 256>}, {transform_indices = @transform_1, window_bounds = array<i64: 64, 256>}, {transform_indices = @transform_2, window_bounds = array<i64: 64, 256>}, {transform_indices = @transform_3, window_bounds = array<i64: 64, 256>}]} {
    %c0 = arith.constant 0 : index
    %c0_0 = arith.constant 0 : index
    %0 = vector.load %arg2[%c0, %c0_0] : memref<64x256xf32, #tpu.memory_space<vmem>>, vector<64x256xf32>
    %c0_1 = arith.constant 0 : index
    %c0_2 = arith.constant 0 : index
    %1 = vector.load %arg1[%c0_1, %c0_2] : memref<64x256xf32, #tpu.memory_space<vmem>>, vector<64x256xf32>
    %2 = arith.addf %0, %1 : vector<64x256xf32>
    %cst = arith.constant 1.000000e+00 : f32
    %3 = vector.broadcast %cst : f32 to vector<64x256xf32>
    %4 = arith.cmpf oge, %2, %3 : vector<64x256xf32>
    %5 = arith.extui %4 : vector<64x256xi1> to vector<64x256xi32>
    %6 = arith.sitofp %5 : vector<64x256xi32> to vector<64x256xf32>
    %7 = arith.truncf %6 : vector<64x256xf32> to vector<64x256xbf16>
    %c0_3 = arith.constant 0 : index
    %c0_4 = arith.constant 0 : index
    %8 = vector.load %arg3[%c0_3, %c0_4] : memref<64x256xbf16, #tpu.memory_space<vmem>>, vector<64x256xbf16>
    tpu.vector_store %arg3[%c0_3, %c0_4], %7 {strides = array<i32>} : memref<64x256xbf16, #tpu.memory_space<vmem>>, vector<64x256xbf16>,
    %cst_5 = arith.constant 0.899999976 : f32
    %9 = vector.broadcast %cst_5 : f32 to vector<64x256xf32>
    %10 = arith.mulf %2, %9 : vector<64x256xf32>
    %cst_6 = arith.constant 0.000000e+00 : f32
    %11 = vector.broadcast %cst_6 : f32 to vector<64x256xf32>
    %12 = arith.select %4, %11, %10 : vector<64x256xi1>, vector<64x256xf32>
    %c0_7 = arith.constant 0 : index
    %c0_8 = arith.constant 0 : index
    %13 = vector.load %arg4[%c0_7, %c0_8] : memref<64x256xf32, #tpu.memory_space<vmem>>, vector<64x256xf32>
    tpu.vector_store %arg4[%c0_7, %c0_8], %12 {strides = array<i32>} : memref<64x256xf32, #tpu.memory_space<vmem>>, vector<64x256xf32>,
    return
  }
  func.func @transform_0(%arg0: i32) -> (i32, i32) {
    %c0_i32 = arith.constant 0 : i32
    %c0_i32_0 = arith.constant 0 : i32
    return %arg0, %c0_i32 : i32, i32
  }
  func.func @transform_1(%arg0: i32) -> (i32, i32) {
    %c0_i32 = arith.constant 0 : i32
    %c0_i32_0 = arith.constant 0 : i32
    return %arg0, %c0_i32 : i32, i32
  }
  func.func @transform_2(%arg0: i32) -> (i32, i32) {
    %c0_i32 = arith.constant 0 : i32
    %c0_i32_0 = arith.constant 0 : i32
    return %arg0, %c0_i32 : i32, i32
  }
  func.func @transform_3(%arg0: i32) -> (i32, i32) {
    %c0_i32 = arith.constant 0 : i32
    %c0_i32_0 = arith.constant 0 : i32
    return %arg0, %c0_i32 : i32, i32
  }
}

</mosaic_0001>

<bundles_post_ra>
// kernel: spiking_neuron_forward.1
= control target key start
LH: loop header
LB: loop body
LE: loop exit
PB: predicated region body
PF: predicated region fallthrough
CT: control target
= control target key end

     0   :  { %9 = vsyncpa [#allocation3], 0  ;;  %s1286_s0 = inlined_call_operand.vmem [shape: f32[128,256], index: 0, kind: input, shape index: {}]   ;;  %s1287_s1 = inlined_call_operand.hbm [shape: f32[128,256], index: 1, kind: input, shape index: {}, may-alias: {1,3}]   ;;  %s1288_s2 = inlined_call_operand.hbm [shape: bf16[128,256], index: 2, kind: output, shape index: {0}]   ;;  %s1289_s3 = inlined_call_operand.hbm [shape: f32[128,256], index: 3, kind: output, shape index: {1}, may-alias: {1,3}]  }
   0x1   :  { %11 = vsyncpa [#allocation3 + $0x1], 0 }
   0x2   :  { %12 = vsyncpa [#allocation4], 0 }
   0x3   :  { %14 = vsyncpa [#allocation4 + $0x1], 0 }
   0x4   :  { %15 = vsyncpa [#allocation7], 0 }
   0x5   :  { %17 = vsyncpa [#allocation7 + $0x1], 0  ;;  %s864_s12 = smov 0   ;;  %s866_s13 = smov 0  }
   0x6   :  { %s868_s14 = smov 0   ;;  %s870_s15 = smov 0  }
   0x7 LB: > { %s885_s16 = sadd.s32 4294967295, %s832_s15   ;;  %s583_s17 = sadd.s32 4294967294, %s832_s15   ;;  %s832_s15 = sphi %s870_s15, %s1302_s15   ;;  %s828_s14 = sphi %s868_s14, %s1301_s14   ;;  %s824_s13 = sphi %s866_s13, %s1300_s13   ;;  %s820_s12 = sphi %s864_s12, %s1299_s12  }
   0x8   : > { %s889_s18 = sadd.s32 1, %s832_s15   ;;  %s56_s19 = sadd.s32 1, %s828_s14 }
   0x9   : > { %s53_s20 = ssub.s32 %s832_s15, %s889_s18  ;;  %p63_p0 = scmp.ne.s32.totalorder %s828_s14, %s824_s13 }
   0xa   : > { %p54_p1 = scmp.eq.s32.totalorder %s53_s20, 0  ;;  %p64_p2 = scmp.eq.s32.totalorder %s832_s15, 0 }
   0xb   : > { %p69_p3 = scmp.ne.s32.totalorder %s824_s13, %s820_s12  ;;  %p70_p4 = scmp.eq.s32.totalorder %s885_s16, 0 }
   0xc   : > { %s901_s21 = scalar_select %p54_p1, %s828_s14, %s56_s19  }
   0xd   : > { %p903_p5 = por %p64_p2, %p63_p0  ;;  %p907_p6 = por %p70_p4, %p69_p3 }
   0xe   : > { %p93_p7 = scmp.eq.s32.totalorder %s885_s16, 1  ;;  %p99_p8 = scmp.eq.s32.totalorder %s583_s17, 1 }
   0xf   : > { %p663_p10 = scmp.lt.s32.totalorder %s832_s15, 2  ;;  %s155_s26 = sand.u32 1, %s828_s14  }
  0x10   : > { %p914_p11 = por %p93_p7, %p63_p0  ;;  %p918_p12 = por %p99_p8, %p69_p3 }
  0x11   : > { %s632_s27 = sshll.u32 %s832_s15, 11  ;;  %s586_s28 = sshll.u32 %s155_s26, 7 }
  0x12   : > { %s1293_s24 = scalar_select %p914_p11, 1, 0 }
  0x13   : > { %s1294_s25 = scalar_select %p918_p12, 1, 0 }
  0x14   : > { %s927_s4 = scalar_lea.hbm %s1287_s1, %s632_s27  ;;  %s159_s5 = scalar_lea.vmem [#allocation2], %s586_s28 }
  0x15   : > { %s167_s6 = sshll.u32 %s159_s5, 4  ;;  %p931_p13 = pnand %p663_p10, %p903_p5  ;;  %s935_s6 = int_to_ptr.vmem [resolvable:$true] %s167_s6 }
  0x16   : > { %s937_s8 = scalar_lea.sflag [#allocation3], %s155_s26  ;;  %s704_s9 = scalar_lea.hbm %s927_s4, 2048 }
  0x17   : > { %p705_p0 = scmp.ne.s32.totalorder %s927_s4, %s704_s9  ;;  %p706_p1 = pneg %p931_p13 }
  0x18   : > { %s709_s17 = scalar_lea.hbm %s1287_s1, 4096  ;;  %p710_p4 = scmp.lt.u32.totalorder %s927_s4, %s1287_s1 }
  0x19   : > { %p707_p2 = pnand %p706_p1, %p705_p0  ;;  %p711_p5 = scmp.lt.u32.totalorder %s709_s17, %s704_s9 }
  0x1a   : > { %p713_p8 = scmp.lt.u32.totalorder %s704_s9, %s927_s4 }
  0x1b   : > { %p708_p3 = pneg %p707_p2  ;;  %p712_p7 = por %p711_p5, %p710_p4 }
  0x1d   : > { %p714_p10 = por %p713_p8, %p712_p7 }
  0x1f   : > { %p715_p9 = pnand %p714_p10, %p708_p3 }
  0x21   : > { %718 = shalt.err (!%p715_p9)
}
  0x22   : > { %s719_s22 = scalar_lea.vmem %s935_s6, 2048  ;;  %s834_s26 = smov [#allocation2]  }
  0x23   : > { %p720_p0 = scmp.ne.s32.totalorder %s935_s6, %s719_s22  ;;  %s724_s27 = sshll.u32 %s834_s26, 4  ;;  %s725_s27 = int_to_ptr.vmem [resolvable:$false] %s724_s27 }
  0x24   : > { %s726_s28 = scalar_lea.vmem %s725_s27, 4096  ;;  %p727_p11 = scmp.lt.s32.totalorder %s935_s6, %s725_s27 }
  0x25   : > { %p722_p2 = pnand %p720_p0, %p706_p1  ;;  %p728_p4 = scmp.lt.s32.totalorder %s726_s28, %s719_s22 }
  0x27   : > { %p723_p12 = pneg %p722_p2  ;;  %p729_p5 = por %p728_p4, %p727_p11 }
  0x29   : > { %p730_p7 = pnand %p729_p5, %p723_p12 }
  0x2b   : > { %733 = shalt.err (!%p730_p7)
}
  0x2c   : > { %s835_s29 = smov 256   ;;  %s836_s30 = smov 16  }
  0x2d   : > { %655 = dma.hbm_to_vmem [thread:$0]  (!%p931_p13), %s927_s4, 2048, %s935_s6, %s937_s8, %s835_s29, %s835_s29, %s836_s30  }
  0x2e   : > { %p590_p9 = scmp.ge.s32.totalorder %s832_s15, 1  ;;  %p175_p1 = scmp.lt.s32.totalorder %s832_s15, 3 }
  0x30   : > { %p176_p3 = pnand %p590_p9, %p175_p1 }
  0x31   : > { %s968_s5 = sand.u32 (!%p176_p3), 1, %s824_s13  }
  0x32   : > { %179 = sbr.rel (%p176_p3) target bundleno = 126 (0x7e), region = 28  ;;  %s591_s9 = sshll.u32 (!%p176_p3), %s968_s5, 7 }
  0x33   : > { %s182_s10 = scalar_lea.sflag (!%p176_p3), [#allocation3], %s968_s5  ;;  %s974_s11 = scalar_lea.vmem (!%p176_p3), [#allocation2], %s591_s9 }
  0x39   : > { %807 = dma.done.wait (%p907_p6), %s182_s10, 2048  }
  0x3a   : > { %809 = vsyncadd (%p907_p6), %s182_s10, 4294965248  ;;  %s594_s4 = sshll.u32 %s885_s16, 3  ;;  %v229_v0 = vld [vmem:[%s974_s11] sm:$0xff]  ;;  %v230_v1 = vld [vmem:[%s974_s11 + $0x8] sm:$0xff]  ;;  %s592_s23 = sshll.u32 %s968_s5, 6  ;;  %v837_v17 = vmov 0.0  }
  0x3b   : > { %p220_p11 = scmp.lt.s32.totalorder %s594_s4, 15  ;;  %v231_v5 = vld [vmem:[%s974_s11 + $0x10] sm:$0xff]  ;;  %v232_v6 = vld [vmem:[%s974_s11 + $0x18] sm:$0xff]  ;;  %v233_v10 = vld [vmem:[%s974_s11 + $0x20] sm:$0xff]  ;;  %s1053_s19 = scalar_lea.vmem [#allocation5], %s592_s23 }
  0x3c   : > { %v234_v13 = vld [vmem:[%s974_s11 + $0x28] sm:$0xff]  ;;  %v235_v21 = vld [vmem:[%s974_s11 + $0x30] sm:$0xff]  ;;  %v236_v22 = vld [vmem:[%s974_s11 + $0x38] sm:$0xff]  ;;  %s449_s20 = sshll.u32 %s1053_s19, 4  ;;  %s643_s22 = sshll.u32 %s885_s16, 10  ;;  %s1112_s20 = int_to_ptr.vmem [resolvable:$true] %s449_s20 }
  0x3d   : > { %s1304_s4 = smov (!%p220_p11, %s594_s4), 15  ;;  %v237_v27 = vld [vmem:[%s974_s11 + $0x40] sm:$0xff]  ;;  %v238_v28 = vld [vmem:[%s974_s11 + $0x48] sm:$0xff]  ;;  %v239_v34 = vld [vmem:[%s974_s11 + $0x50] sm:$0xff]  ;;  %s1128_s26 = scalar_lea.vmem [#allocation6], %s591_s9 }
  0x3e   : > { %s633_s6 = sshll.u32 %s1304_s4, 4  ;;  %v240_v38 = vld [vmem:[%s974_s11 + $0x58] sm:$0xff]  ;;  %v241_v44 = vld [vmem:[%s974_s11 + $0x60] sm:$0xff]  ;;  %v242_v45 = vld [vmem:[%s974_s11 + $0x68] sm:$0xff]  ;;  %s1134_s29 = scalar_lea.hbm %s1288_s2, %s643_s22 }
  0x3f   : > { %s984_s17 = scalar_lea.vmem %s1286_s0, %s633_s6  ;;  %v243_v51 = vld [vmem:[%s974_s11 + $0x70] sm:$0xff]  ;;  %v244_v54 = vld [vmem:[%s974_s11 + $0x78] sm:$0xff]  ;;  %s645_s30 = sshll.u32 %s885_s16, 11 }
  0x40   : > { %v245_v2 = vld [vmem:[%s984_s17] sm:$0xff]  ;;  %v246_v3 = vld [vmem:[%s984_s17 + $0x8] sm:$0xff]  ;;  %v247_v8 = vld [vmem:[%s984_s17 + $0x10] sm:$0xff]  ;;  %s466_s9 = sshll.u32 %s1128_s26, 4  ;;  %s430_s10 = scalar_lea.sflag [#allocation4], %s968_s5  ;;  %s1228_s9 = int_to_ptr.vmem [resolvable:$true] %s466_s9 }
  0x41   : > { %v991_v4 = vadd.f32 %v245_v2, %v229_v0  ;;  %v995_v7 = vadd.f32 %v246_v3, %v230_v1  ;;  %v248_v9 = vld [vmem:[%s984_s17 + $0x18] sm:$0xff]  ;;  %v1001_v11 = vadd.f32 %v247_v8, %v231_v5  ;;  %v249_v14 = vld [vmem:[%s984_s17 + $0x20] sm:$0xff]  ;;  %v250_v15 = vld [vmem:[%s984_s17 + $0x28] sm:$0xff]  ;;  %s734_s11 = scalar_lea.vmem %s1112_s20, 1024  ;;  %p1296_p12 = scmp.ne.s32.totalorder %s1293_s24, 0 }
  0x42   : > { %v1003_v12 = vadd.f32 %v248_v9, %v232_v6  ;;  %v1015_v19 = vadd.f32 %v249_v14, %v233_v10  ;;  %v1017_v20 = vadd.f32 %v250_v15, %v234_v13  ;;  %v251_v23 = vld [vmem:[%s984_s17 + $0x30] sm:$0xff]  ;;  %v252_v25 = vld [vmem:[%s984_s17 + $0x38] sm:$0xff]  ;;  %v253_v32 = vld [vmem:[%s984_s17 + $0x40] sm:$0xff]  ;;  %p735_p6 = scmp.ne.s32.totalorder %s1112_s20, %s734_s11  ;;  %s838_s4 = smov [#allocation5]  }
  0x43   : > { %vm277_vm0 = vcmp.ge.f32.partialorder %v991_v4, 1.0  ;;  %v1009_v16 = vmul.f32 0.9, %v991_v4  ;;  %vm278_vm1 = vcmp.ge.f32.partialorder %v995_v7, 1.0  ;;  %vm279_vm2 = vcmp.ge.f32.partialorder %v1001_v11, 1.0  ;;  %v254_v33 = vld [vmem:[%s984_s17 + $0x48] sm:$0xff] }
  0x44   : > { %v597_v18 = vsel %vm277_vm0, 1.0, %v837_v17  ;;  %v598_v24 = vsel %vm278_vm1, 1.0, %v837_v17  ;;  %vm280_vm3 = vcmp.ge.f32.partialorder %v1003_v12, 1.0  ;;  %v1028_v26 = vadd.f32 %v251_v23, %v235_v21  ;;  %v255_v39 = vld [vmem:[%s984_s17 + $0x50] sm:$0xff]  ;;  %v256_v40 = vld [vmem:[%s984_s17 + $0x58] sm:$0xff]  ;;  %v257_v49 = vld [vmem:[%s984_s17 + $0x60] sm:$0xff]  ;;  %p736_p13 = pnand %p735_p6, %p1296_p12 }
  0x45   : > { %v634_v29 = vpack.c.bf16 %v598_v24, %v597_v18  ;;  %v599_v30 = vsel %vm279_vm2, 1.0, %v837_v17  ;;  %v600_v31 = vsel %vm280_vm3, 1.0, %v837_v17  ;;  %vm281_vm4 = vcmp.ge.f32.partialorder %v1015_v19, 1.0  ;;  %v258_v50 = vld [vmem:[%s984_s17 + $0x68] sm:$0xff]  ;;  %v259_v55 = vld [vmem:[%s984_s17 + $0x70] sm:$0xff]  ;;  %v260_v56 = vld [vmem:[%s984_s17 + $0x78] sm:$0xff] }
  0x46   : > { %v635_v35 = vpack.c.bf16 %v600_v31, %v599_v30  ;;  %vm282_vm5 = vcmp.ge.f32.partialorder %v1017_v20, 1.0  ;;  %v601_v36 = vsel %vm281_vm4, 1.0, %v837_v17  ;;  %v1046_v37 = vadd.f32 %v252_v25, %v236_v22  ;;  %p737_p8 = pneg %p736_p13  ;;  %s738_s6 = sshll.u32 %s838_s4, 4  ;;  %s739_s6 = int_to_ptr.vmem [resolvable:$false] %s738_s6 }
  0x47   : > { %373 = vst [vmem:[%s1053_s19] sm:$0xff] %v634_v29  ;;  %v602_v41 = vsel %vm282_vm5, 1.0, %v837_v17  ;;  %vm283_vm6 = vcmp.ge.f32.partialorder %v1028_v26, 1.0  ;;  %v1060_v42 = vadd.f32 %v253_v32, %v237_v27  ;;  %v1062_v43 = vadd.f32 %v254_v33, %v238_v28  ;;  %s740_s7 = scalar_lea.vmem %s739_s6, 2048  ;;  %p741_p10 = scmp.lt.s32.totalorder %s1112_s20, %s739_s6 }
  0x48   : > { %374 = vst [vmem:[%s1053_s19 + $0x8] sm:$0xff] %v635_v35  ;;  %v636_v46 = vpack.c.bf16 %v602_v41, %v601_v36  ;;  %vm284_vm7 = vcmp.ge.f32.partialorder %v1046_v37, 1.0  ;;  %v603_v47 = vsel %vm283_vm6, 1.0, %v837_v17  ;;  %v1071_v48 = vadd.f32 %v255_v39, %v239_v34  ;;  %p742_p0 = scmp.lt.s32.totalorder %s740_s7, %s734_s11 }
  0x49   : > { %v604_v52 = vsel %vm284_vm7, 1.0, %v837_v17  ;;  %vm285_vm8 = vcmp.ge.f32.partialorder %v1060_v42, 1.0  ;;  %vm286_vm9 = vcmp.ge.f32.partialorder %v1062_v43, 1.0  ;;  %v1081_v53 = vadd.f32 %v256_v40, %v240_v38 }
  0x4a   : > { %375 = vst [vmem:[%s1053_s19 + $0x10] sm:$0xff] %v636_v46  ;;  %v637_v57 = vpack.c.bf16 %v604_v52, %v603_v47  ;;  %v605_v58 = vsel %vm285_vm8, 1.0, %v837_v17  ;;  %v606_v59 = vsel %vm286_vm9, 1.0, %v837_v17  ;;  %vm287_vm10 = vcmp.ge.f32.partialorder %v1071_v48, 1.0  ;;  %p743_p2 = por %p742_p0, %p741_p10 }
  0x4b   : > { %v638_v60 = vpack.c.bf16 %v606_v59, %v605_v58  ;;  %vm288_vm11 = vcmp.ge.f32.partialorder %v1081_v53, 1.0  ;;  %v607_v61 = vsel %vm287_vm10, 1.0, %v837_v17  ;;  %v1099_v62 = vadd.f32 %v257_v49, %v241_v44 }
  0x4c   : > { %376 = vst [vmem:[%s1053_s19 + $0x18] sm:$0xff] %v637_v57  ;;  %v608_v63 = vsel %vm288_vm11, 1.0, %v837_v17  ;;  %v1106_v0 = vadd.f32 %v258_v50, %v242_v45  ;;  %v1108_v1 = vadd.f32 %v259_v55, %v243_v51  ;;  %v1110_v2 = vadd.f32 %v260_v56, %v244_v54  ;;  %p744_p4 = pnand %p743_p2, %p737_p8 }
  0x4d   : > { %377 = vst [vmem:[%s1053_s19 + $0x20] sm:$0xff] %v638_v60  ;;  %v639_v3 = vpack.c.bf16 %v608_v63, %v607_v61  ;;  %vm289_vm12 = vcmp.ge.f32.partialorder %v1099_v62, 1.0  ;;  %v397_v5 = vsel %vm277_vm0, 0.0, %v1009_v16  ;;  %v382_v6 = vmul.f32 0.9, %v995_v7 }
  0x4e   : > { %vm290_vm13 = vcmp.ge.f32.partialorder %v1106_v0, 1.0  ;;  %v609_v8 = vsel %vm289_vm12, 1.0, %v837_v17  ;;  %vm291_vm14 = vcmp.ge.f32.partialorder %v1108_v1, 1.0  ;;  %vm292_vm15 = vcmp.ge.f32.partialorder %v1110_v2, 1.0  ;;  %413 = vst [vmem:[%s1128_s26] sm:$0xff] %v397_v5 }
  0x4f   : > { %378 = vst [vmem:[%s1053_s19 + $0x28] sm:$0xff] %v639_v3  ;;  %v610_v4 = vsel %vm290_vm13, 1.0, %v837_v17  ;;  %v611_v9 = vsel %vm291_vm14, 1.0, %v837_v17  ;;  %v612_v10 = vsel %vm292_vm15, 1.0, %v837_v17  ;;  %v398_v13 = vsel %vm278_vm1, 0.0, %v382_v6 }
  0x50   : > { %v640_v14 = vpack.c.bf16 %v610_v4, %v609_v8  ;;  %v641_v15 = vpack.c.bf16 %v612_v10, %v611_v9  ;;  %414 = vst [vmem:[%s1128_s26 + $0x8] sm:$0xff] %v398_v13  ;;  %v383_v16 = vmul.f32 0.9, %v1001_v11  ;;  %v384_v18 = vmul.f32 0.9, %v1003_v12 }
  0x51   : > { %v385_v21 = vmul.f32 0.9, %v1015_v19  ;;  %v386_v17 = vmul.f32 0.9, %v1017_v20  ;;  %v387_v7 = vmul.f32 0.9, %v1028_v26 }
  0x52   : > { %379 = vst [vmem:[%s1053_s19 + $0x30] sm:$0xff] %v640_v14  ;;  %380 = vst [vmem:[%s1053_s19 + $0x38] sm:$0xff] %v641_v15  ;;  %v399_v22 = vsel %vm279_vm2, 0.0, %v383_v16  ;;  %v400_v23 = vsel %vm280_vm3, 0.0, %v384_v18  ;;  %v388_v24 = vmul.f32 0.9, %v1046_v37 }
  0x53   : > { %v389_v25 = vmul.f32 0.9, %v1060_v42  ;;  %415 = vst [vmem:[%s1128_s26 + $0x10] sm:$0xff] %v399_v22  ;;  %416 = vst [vmem:[%s1128_s26 + $0x18] sm:$0xff] %v400_v23  ;;  %v401_v27 = vsel %vm281_vm4, 0.0, %v385_v21  ;;  %v402_v28 = vsel %vm282_vm5, 0.0, %v386_v17 }
  0x54   : > { %v403_v11 = vsel %vm283_vm6, 0.0, %v387_v7  ;;  %v390_v29 = vmul.f32 0.9, %v1062_v43 }
  0x55   : > { %747 = shalt.err (!%p744_p4)
}
  0x56   : > { %s748_s8 = scalar_lea.hbm %s1134_s29, 1024  ;;  %s752_s19 = scalar_lea.hbm %s1288_s2, 2048 }
  0x57   : > { %p749_p5 = scmp.ne.s32.totalorder %s1134_s29, %s748_s8  ;;  %p753_p1 = scmp.lt.u32.totalorder %s1134_s29, %s1288_s2 }
  0x58   : > { %p754_p3 = scmp.lt.u32.totalorder %s752_s19, %s748_s8  ;;  %p756_p6 = scmp.lt.u32.totalorder %s748_s8, %s1134_s29 }
  0x59   : > { %p750_p7 = pnand %p749_p5, %p1296_p12 }
  0x5a   : > { %p755_p11 = por %p754_p3, %p753_p1 }
  0x5b   : > { %p751_p9 = pneg %p750_p7 }
  0x5c   : > { %p757_p13 = por %p756_p6, %p755_p11 }
  0x5e   : > { %p758_p8 = pnand %p757_p13, %p751_p9 }
  0x60   : > { %761 = shalt.err (!%p758_p8)
}
  0x61   : > { %s839_s28 = smov 128   ;;  %s840_s11 = smov 8   ;;  %417 = vst [vmem:[%s1128_s26 + $0x20] sm:$0xff] %v401_v27  ;;  %418 = vst [vmem:[%s1128_s26 + $0x28] sm:$0xff] %v402_v28  ;;  %v404_v12 = vsel %vm284_vm7, 0.0, %v388_v24  ;;  %v405_v19 = vsel %vm285_vm8, 0.0, %v389_v25 }
  0x62   : > { %648 = dma.vmem_to_hbm [thread:$0]  (%p1296_p12), %s1112_s20, 1024, %s1134_s29, %s430_s10, %s839_s28, %s839_s28, %s840_s11   ;;  %v391_v20 = vmul.f32 0.9, %v1071_v48  ;;  %v392_v26 = vmul.f32 0.9, %v1081_v53  ;;  %v406_v30 = vsel %vm286_vm9, 0.0, %v390_v29 }
  0x63   : > { %419 = vst [vmem:[%s1128_s26 + $0x30] sm:$0xff] %v403_v11  ;;  %420 = vst [vmem:[%s1128_s26 + $0x38] sm:$0xff] %v404_v12  ;;  %v393_v31 = vmul.f32 0.9, %v1099_v62  ;;  %v394_v32 = vmul.f32 0.9, %v1106_v0  ;;  %s1224_s10 = scalar_lea.hbm %s1289_s3, %s645_s30 }
  0x64   : > { %421 = vst [vmem:[%s1128_s26 + $0x40] sm:$0xff] %v405_v19  ;;  %422 = vst [vmem:[%s1128_s26 + $0x48] sm:$0xff] %v406_v30  ;;  %v407_v33 = vsel %vm287_vm10, 0.0, %v391_v20  ;;  %v408_v34 = vsel %vm288_vm11, 0.0, %v392_v26  ;;  %v395_v35 = vmul.f32 0.9, %v1108_v1 }
  0x65   : > { %v396_v36 = vmul.f32 0.9, %v1110_v2  ;;  %423 = vst [vmem:[%s1128_s26 + $0x50] sm:$0xff] %v407_v33  ;;  %424 = vst [vmem:[%s1128_s26 + $0x58] sm:$0xff] %v408_v34  ;;  %v409_v37 = vsel %vm289_vm12, 0.0, %v393_v31  ;;  %v410_v38 = vsel %vm290_vm13, 0.0, %v394_v32 }
  0x66   : > { %425 = vst [vmem:[%s1128_s26 + $0x60] sm:$0xff] %v409_v37  ;;  %426 = vst [vmem:[%s1128_s26 + $0x68] sm:$0xff] %v410_v38  ;;  %v411_v39 = vsel %vm291_vm14, 0.0, %v395_v35  ;;  %s435_s16 = scalar_lea.sflag [#allocation7], %s968_s5  ;;  %s762_s30 = scalar_lea.vmem %s1228_s9, 2048 }
  0x67   : > { %v412_v40 = vsel %vm292_vm15, 0.0, %v396_v36  ;;  %427 = vst [vmem:[%s1128_s26 + $0x70] sm:$0xff] %v411_v39  ;;  %p763_p10 = scmp.ne.s32.totalorder %s1228_s9, %s762_s30  ;;  %s841_s4 = smov [#allocation6]  }
  0x68   : > { %428 = vst [vmem:[%s1128_s26 + $0x78] sm:$0xff] %v412_v40  ;;  %s766_s6 = sshll.u32 %s841_s4, 4  ;;  %s767_s6 = int_to_ptr.vmem [resolvable:$false] %s766_s6 }
  0x69   : > { %p764_p0 = pnand %p763_p10, %p1296_p12  ;;  %s768_s7 = scalar_lea.vmem %s767_s6, 4096 }
  0x6a   : > { %p769_p4 = scmp.lt.s32.totalorder %s1228_s9, %s767_s6  ;;  %p770_p5 = scmp.lt.s32.totalorder %s768_s7, %s762_s30 }
  0x6b   : > { %p765_p2 = pneg %p764_p0 }
  0x6c   : > { %p771_p7 = por %p770_p5, %p769_p4 }
  0x6e   : > { %p772_p9 = pnand %p771_p7, %p765_p2 }
  0x70   : > { %775 = shalt.err (!%p772_p9)
}
  0x71   : > { %s776_s26 = scalar_lea.hbm %s1224_s10, 2048  ;;  %s780_s23 = scalar_lea.hbm %s1289_s3, 4096 }
  0x72   : > { %p777_p1 = scmp.ne.s32.totalorder %s1224_s10, %s776_s26  ;;  %p781_p6 = scmp.lt.u32.totalorder %s1224_s10, %s1289_s3 }
  0x73   : > { %p782_p13 = scmp.lt.u32.totalorder %s780_s23, %s776_s26  ;;  %p784_p10 = scmp.lt.u32.totalorder %s776_s26, %s1224_s10 }
  0x74   : > { %p778_p3 = pnand %p777_p1, %p1296_p12 }
  0x75   : > { %p783_p8 = por %p782_p13, %p781_p6 }
  0x76   : > { %p779_p11 = pneg %p778_p3 }
  0x77   : > { %p785_p0 = por %p784_p10, %p783_p8 }
  0x79   : > { %p786_p2 = pnand %p785_p0, %p779_p11 }
  0x7b   : > { %789 = shalt.err (!%p786_p2)
}
  0x7c   : > { %s842_s27 = smov 256   ;;  %s843_s28 = smov 16  }
  0x7d   : > { %649 = dma.vmem_to_hbm [thread:$0]  (%p1296_p12), %s1228_s9, 2048, %s1224_s10, %s435_s16, %s842_s27, %s842_s27, %s843_s28  }
  0x7e PF: > { %s481_s11 = sand.u32 1, %s820_s12   ;;  %p1297_p4 = scmp.ne.s32.totalorder %s1294_s25, 0 }
  0x7f   : > { %p1298_p5 = scmp.ge.s32.totalorder %s832_s15, 2  ;;  %s482_s20 = scalar_lea.sflag [#allocation4], %s481_s11 }
  0x81   : > { %p657_p7 = pnand %p1298_p5, %p1297_p4 }
  0x83   : > { %811 = dma.done.wait (!%p657_p7), %s482_s20, 1024  }
  0x84   : > { %813 = vsyncadd (!%p657_p7), %s482_s20, 4294966272  ;;  %s491_s29 = scalar_lea.sflag [#allocation7], %s481_s11 }
  0x85   : > { %815 = dma.done.wait (!%p657_p7), %s491_s29, 2048  }
  0x86   : > { %817 = vsyncadd (!%p657_p7), %s491_s29, 4294965248  ;;  %p20_p12 = scmp.ge.s32.totalorder %s889_s18, 4   ;;  %s1299_s12 = smov %s824_s13 }
  0x87   : > { %s1300_s13 = smov %s828_s14  ;;  %s1301_s14 = smov %s901_s21 }
  0x88   : > { %s1302_s15 = smov %s889_s18  ;;  %22 = sbr.rel (!%p20_p12) target bundleno = 7 (0x7), region = 93 }
  0x8f   :  { %496 = vsyncpa [#allocation3], 1 }
  0x90   :  { %498 = vsyncpa [#allocation3 + $0x1], 1 }
  0x91   :  { %499 = vsyncpa [#allocation4], 1 }
  0x92   :  { %501 = vsyncpa [#allocation4 + $0x1], 1 }
  0x93   :  { %502 = vsyncpa [#allocation7], 1 }
  0x94   :  { %504 = vsyncpa [#allocation7 + $0x1], 1 }

</bundles_post_ra>
